<compile_context>
chip_gen: v7x
topology: tpu7x:2x2x1
jax: 0.10.0
libtpu: 0.0.40
codegen_flags: <defaults>
</compile_context>

<pallas_src>
from functools import partial

import jax
import jax.numpy as jnp
from jax.experimental import pallas as pl
from jax.experimental.pallas import tpu as pltpu

_LANE = 128
_MAX_TILE = 512
_VMEM_LIMIT = 32 * 1024 * 1024  # raise v5e's 16 MiB default; safe on v6e/v7x


def _round_up(n, m):
    return ((n + m - 1) // m) * m


def _pad_and_tile(n):
    """Pad a node/edge count to a tile-friendly size and pick the tile."""
    p = _round_up(max(int(n), 1), _LANE)
    if p <= _MAX_TILE:
        return p, p
    return _round_up(int(n), _MAX_TILE), _MAX_TILE


# ---------------------------------------------------------------------------
# Kernel 1: small tiled linear   XW = (X @ W + b)  -> bf16
# ---------------------------------------------------------------------------
def _lin_kernel(x_ref, w_ref, b_ref, o_ref):
    xw = jnp.dot(x_ref[...], w_ref[...], preferred_element_type=jnp.float32)
    o_ref[...] = (xw + b_ref[...]).astype(o_ref.dtype)


def lin_bias_bf16(x, w, b, *, row_tile):
    rows, din = x.shape
    dout = w.shape[1]
    grid = (rows // row_tile,)
    return pl.pallas_call(
        _lin_kernel,
        out_shape=jax.ShapeDtypeStruct((rows, dout), jnp.bfloat16),
        grid=grid,
        in_specs=[
            pl.BlockSpec((row_tile, din), lambda i: (i, 0)),
            pl.BlockSpec((din, dout), lambda i: (0, 0)),   # resident (constant block)
            pl.BlockSpec((1, dout), lambda i: (0, 0)),
        ],
        out_specs=pl.BlockSpec((row_tile, dout), lambda i: (i, 0)),
        compiler_params=pltpu.CompilerParams(
            dimension_semantics=("parallel",),
            vmem_limit_bytes=_VMEM_LIMIT,
        ),
        cost_estimate=pl.CostEstimate(
            flops=2 * rows * din * dout,
            transcendentals=0,
            bytes_accessed=x.nbytes + w.nbytes + b.nbytes + rows * dout * 2,
        ),
    )(x, w, b)


# ---------------------------------------------------------------------------
# Kernel 2: tiled aggregation   out = PReLU( scale * (M [or M^T] @ XW) )
#   grid = (rows/row_tile, K/k_tile); fp32 accumulator resident across K.
# ---------------------------------------------------------------------------
def _agg_kernel(m_ref, xw_ref, scale_ref, alpha_ref, o_ref, acc_ref, *, transpose):
    k = pl.program_id(1)

    @pl.when(k == 0)
    def _init():
        acc_ref[...] = jnp.zeros_like(acc_ref)

    if transpose:
        # M block is (k_tile, row_tile): contract over axis 0 of both operands,
        # i.e. (M^T @ XW) without ever materializing H^T in HBM.
        acc_ref[...] += jax.lax.dot_general(
            m_ref[...], xw_ref[...],
            dimension_numbers=(((0,), (0,)), ((), ())),
            preferred_element_type=jnp.float32)
    else:
        acc_ref[...] += jnp.dot(
            m_ref[...], xw_ref[...], preferred_element_type=jnp.float32)

    @pl.when(k == pl.num_programs(1) - 1)
    def _finish():
        out = scale_ref[...] * acc_ref[...]       # per-row degree normalization
        a = alpha_ref[0]                          # PReLU slope (scalar in SMEM)
        o_ref[...] = jnp.where(out >= 0.0, out, a * out)


def agg_scale_prelu(m, xw, scale, alpha, *, transpose, row_tile, k_tile):
    if transpose:
        kdim, rows = m.shape
        m_spec = pl.BlockSpec((k_tile, row_tile), lambda i, k: (k, i))
    else:
        rows, kdim = m.shape
        m_spec = pl.BlockSpec((row_tile, k_tile), lambda i, k: (i, k))
    dpad = xw.shape[1]
    grid = (rows // row_tile, kdim // k_tile)
    return pl.pallas_call(
        partial(_agg_kernel, transpose=transpose),
        out_shape=jax.ShapeDtypeStruct((rows, dpad), jnp.float32),
        grid=grid,
        in_specs=[
            m_spec,                                                     # H (bf16)
            pl.BlockSpec((k_tile, dpad), lambda i, k: (k, 0)),          # XW (bf16)
            pl.BlockSpec((row_tile, 1), lambda i, k: (i, 0)),           # 1/deg
            pl.BlockSpec(memory_space=pltpu.MemorySpace.SMEM),          # PReLU alpha
        ],
        out_specs=pl.BlockSpec((row_tile, dpad), lambda i, k: (i, 0)),
        scratch_shapes=[pltpu.VMEM((row_tile, dpad), jnp.float32)],
        compiler_params=pltpu.CompilerParams(
            dimension_semantics=("parallel", "arbitrary"),
            vmem_limit_bytes=_VMEM_LIMIT,
        ),
        cost_estimate=pl.CostEstimate(
            flops=2 * rows * kdim * dpad,
            transcendentals=0,
            bytes_accessed=m.nbytes + xw.nbytes + scale.nbytes + rows * dpad * 4,
        ),
    )(m, xw, scale, alpha)


# ---------------------------------------------------------------------------
# Parameters (PyTorch-style init) and forward pass
# ---------------------------------------------------------------------------
def init_params(key, in_dim, edge_dim, node_dim, num_layers=2):
    """Linear: U(-1/sqrt(fan_in), +1/sqrt(fan_in)); shared PReLU alpha=0.25."""
    params = {"alpha": jnp.array([0.25], dtype=jnp.float32), "convs": []}
    if num_layers == 1:
        dims = [(in_dim, edge_dim, node_dim)]
    else:
        dims = [(in_dim, edge_dim, node_dim)] + \
               [(node_dim, edge_dim, node_dim)] * (num_layers - 1)
    for (din, dhid, dout) in dims:
        key, k1, k2, k3, k4 = jax.random.split(key, 5)
        s1 = 1.0 / jnp.sqrt(jnp.float32(din))
        s2 = 1.0 / jnp.sqrt(jnp.float32(dhid))
        params["convs"].append({
            "w_n2e": jax.random.uniform(k1, (din, dhid), jnp.float32, -s1, s1),
            "b_n2e": jax.random.uniform(k2, (1, dhid), jnp.float32, -s1, s1),
            "w_e2n": jax.random.uniform(k3, (dhid, dout), jnp.float32, -s2, s2),
            "b_e2n": jax.random.uniform(k4, (1, dout), jnp.float32, -s2, s2),
        })
    return params


def tricl_forward(params, x, hyperedge_index, num_nodes=None, num_edges=None):
    # NOTE: pass num_nodes / num_edges explicitly to avoid a host sync under jit.
    if num_nodes is None:
        num_nodes = int(hyperedge_index[0].max()) + 1
    if num_edges is None:
        num_edges = int(hyperedge_index[1].max()) + 1
    N, E = int(num_nodes), int(num_edges)
    E_tot = E + N

    # Self-loop hyperedges (one per node), exactly as in TriCL.forward.
    node_idx = jnp.arange(N, dtype=hyperedge_index.dtype)
    edge_idx = jnp.arange(E, E_tot, dtype=hyperedge_index.dtype)
    full_idx = jnp.concatenate(
        [hyperedge_index, jnp.stack([node_idx, edge_idx])], axis=1)

    # Padded sizes + tile choices.
    Npad, tile_n = _pad_and_tile(N)
    Epad, tile_e = _pad_and_tile(E_tot)

    # Dense incidence (glue, plain JAX): H[node, edge] = multiplicity.
    H = jnp.zeros((Npad, Epad), jnp.float32).at[full_idx[0], full_idx[1]].add(1.0)

    # Row-norm degrees: 1/deg, zero-degree (incl. padding) -> 0.
    De = H.sum(axis=0)
    Dn = H.sum(axis=1)
    de_inv = jnp.where(De > 0, 1.0 / De, 0.0).reshape(Epad, 1).astype(jnp.float32)
    dn_inv = jnp.where(Dn > 0, 1.0 / Dn, 0.0).reshape(Npad, 1).astype(jnp.float32)

    # Single bf16 incidence array used for BOTH directions (no H^T in HBM).
    Hb = H.astype(jnp.bfloat16)   # exact: small integer counts

    alpha = params["alpha"]

    din = x.shape[1]
    din_pad = _round_up(din, _LANE)
    n_feat = jnp.pad(x.astype(jnp.float32), ((0, Npad - N), (0, din_pad - din)))

    e_feat = None
    edge_dim = node_dim = None
    for conv in params["convs"]:
        w1, b1 = conv["w_n2e"], conv["b_n2e"]
        w2, b2 = conv["w_e2n"], conv["b_e2n"]
        edge_dim, node_dim = w1.shape[1], w2.shape[1]
        dh_pad = _round_up(edge_dim, _LANE)
        do_pad = _round_up(node_dim, _LANE)

        # Zero-pad weights / biases to lane-dense shapes (exact: zeros).
        w1p = jnp.pad(w1, ((0, n_feat.shape[1] - w1.shape[0]), (0, dh_pad - edge_dim)))
        b1p = jnp.pad(b1, ((0, 0), (0, dh_pad - edge_dim)))
        w2p = jnp.pad(w2, ((0, dh_pad - w2.shape[0]), (0, do_pad - node_dim)))
        b2p = jnp.pad(b2, ((0, 0), (0, do_pad - node_dim)))

        # node -> edge: e = PReLU(De^-1 * H^T @ (n @ W1 + b1))
        xw = lin_bias_bf16(n_feat, w1p, b1p, row_tile=tile_n)           # (Npad, dh_pad)
        e_feat = agg_scale_prelu(Hb, xw, de_inv, alpha, transpose=True,
                                 row_tile=tile_e, k_tile=tile_n)        # (Epad, dh_pad)

        # edge -> node: n = PReLU(Dn^-1 * H @ (e @ W2 + b2))  (act applied by encoder)
        ew = lin_bias_bf16(e_feat, w2p, b2p, row_tile=tile_e)           # (Epad, do_pad)
        n_feat = agg_scale_prelu(Hb, ew, dn_inv, alpha, transpose=False,
                                 row_tile=tile_n, k_tile=tile_e)        # (Npad, do_pad)

    # TriCL.forward returns node embeddings and edge embeddings w/o self-loops.
    n_out = n_feat[:N, :node_dim]
    e_out = e_feat[:E, :edge_dim]
    return n_out, e_out


# ---------------------------------------------------------------------------
# Pure-JAX reference (unpadded, fp32) for a correctness check.
# ---------------------------------------------------------------------------
def reference_forward(params, x, hyperedge_index, num_nodes, num_edges):
    N, E = int(num_nodes), int(num_edges)
    E_tot = E + N
    node_idx = jnp.arange(N, dtype=hyperedge_index.dtype)
    edge_idx = jnp.arange(E, E_tot, dtype=hyperedge_index.dtype)
    full_idx = jnp.concatenate(
        [hyperedge_index, jnp.stack([node_idx, edge_idx])], axis=1)
    H = jnp.zeros((N, E_tot), jnp.float32).at[full_idx[0], full_idx[1]].add(1.0)
    De, Dn = H.sum(axis=0), H.sum(axis=1)
    de_inv = jnp.where(De > 0, 1.0 / De, 0.0).reshape(E_tot, 1)
    dn_inv = jnp.where(Dn > 0, 1.0 / Dn, 0.0).reshape(N, 1)
    a = params["alpha"][0]
    prelu = lambda v: jnp.where(v >= 0.0, v, a * v)
    n = x.astype(jnp.float32)
    e = None
    for conv in params["convs"]:
        e = prelu(de_inv * (H.T @ (n @ conv["w_n2e"] + conv["b_n2e"])))
        n = prelu(dn_inv * (H @ (e @ conv["w_e2n"] + conv["b_e2n"])))
    return n, e[:E]


if __name__ == "__main__":
    key = jax.random.PRNGKey(0)
    num_nodes, num_edges = 12, 6
    in_dim, edge_dim, node_dim = 16, 32, 32
    nnz = 24

    kx, ki, kj, kp = jax.random.split(key, 4)
    x = jax.random.normal(kx, (num_nodes, in_dim), dtype=jnp.float32)
    rows = jax.random.randint(ki, (nnz,), 0, num_nodes, dtype=jnp.int32)
    cols = jax.random.randint(kj, (nnz,), 0, num_edges, dtype=jnp.int32)
    hyperedge_index = jnp.stack([rows, cols])

    params = init_params(kp, in_dim, edge_dim, node_dim, num_layers=2)

    n, e = tricl_forward(params, x, hyperedge_index, num_nodes, num_edges)
    jax.block_until_ready((n, e))

    assert n.shape == (num_nodes, node_dim), n.shape
    assert e.shape == (num_edges, edge_dim), e.shape
    assert n.dtype == jnp.float32 and e.dtype == jnp.float32

    n_ref, e_ref = reference_forward(params, x, hyperedge_index, num_nodes, num_edges)
    err = max(float(jnp.max(jnp.abs(n - n_ref))), float(jnp.max(jnp.abs(e - e_ref))))
    assert err < 5e-2, f"max abs error vs reference too large: {err}"

    print("KERNEL_OK")
</pallas_src>

<mosaic_0001>
module attributes {stable_mosaic.version = 11 : i64} {
  func.func @_lin_kernel(%arg0: i32, %arg1: memref<128x128xf32, #tpu.memory_space<vmem>>, %arg2: memref<128x128xf32, #tpu.memory_space<vmem>>, %arg3: memref<1x128xf32, #tpu.memory_space<vmem>>, %arg4: memref<128x128xbf16, #tpu.memory_space<vmem>>) attributes {dimension_semantics = [#tpu.dimension_semantics<parallel>], iteration_bounds = array<i64: 1>, scalar_prefetch = 0 : i64, scratch_operands = 0 : i64, tpu.core_type = #tpu.core_type<tc>, window_params = [{transform_indices = @transform_0, window_bounds = array<i64: 128, 128>}, {pipeline_mode = #tpu.pipeline_mode<synchronous>, transform_indices = @transform_1, window_bounds = array<i64: 128, 128>}, {pipeline_mode = #tpu.pipeline_mode<synchronous>, transform_indices = @transform_2, window_bounds = array<i64: 1, 128>}, {transform_indices = @transform_3, window_bounds = array<i64: 128, 128>}]} {
    %c0 = arith.constant 0 : index
    %c0_0 = arith.constant 0 : index
    %0 = vector.load %arg1[%c0, %c0_0] : memref<128x128xf32, #tpu.memory_space<vmem>>, vector<128x128xf32>
    %c0_1 = arith.constant 0 : index
    %c0_2 = arith.constant 0 : index
    %1 = vector.load %arg2[%c0_1, %c0_2] : memref<128x128xf32, #tpu.memory_space<vmem>>, vector<128x128xf32>
    %cst = arith.constant dense<0.000000e+00> : vector<128x128xf32>
    %2 = tpu.matmul %0, %1, %cst {dimension_numbers = #tpu.dot_dimension_numbers<[1], [0], [0], [1], [0, 0, 1, 1], [], []>} : vector<128x128xf32>, vector<128x128xf32>, vector<128x128xf32> -> vector<128x128xf32>
    %c0_3 = arith.constant 0 : index
    %c0_4 = arith.constant 0 : index
    %3 = vector.load %arg3[%c0_3, %c0_4] : memref<1x128xf32, #tpu.memory_space<vmem>>, vector<1x128xf32>
    %4 = vector.broadcast %3 : vector<1x128xf32> to vector<128x128xf32>
    %5 = arith.addf %2, %4 : vector<128x128xf32>
    %6 = arith.truncf %5 : vector<128x128xf32> to vector<128x128xbf16>
    %c0_5 = arith.constant 0 : index
    %c0_6 = arith.constant 0 : index
    %7 = vector.load %arg4[%c0_5, %c0_6] : memref<128x128xbf16, #tpu.memory_space<vmem>>, vector<128x128xbf16>
    tpu.vector_store %arg4[%c0_5, %c0_6], %6 {strides = array<i32>} : memref<128x128xbf16, #tpu.memory_space<vmem>>, vector<128x128xbf16>,
    return
  }
  func.func @transform_0(%arg0: i32) -> (i32, i32) {
    %c0_i32 = arith.constant 0 : i32
    %c0_i32_0 = arith.constant 0 : i32
    return %arg0, %c0_i32 : i32, i32
  }
  func.func @transform_1(%arg0: i32) -> (i32, i32) {
    %c0_i32 = arith.constant 0 : i32
    %c0_i32_0 = arith.constant 0 : i32
    %c0_i32_1 = arith.constant 0 : i32
    return %c0_i32, %c0_i32_0 : i32, i32
  }
  func.func @transform_2(%arg0: i32) -> (i32, i32) {
    %c0_i32 = arith.constant 0 : i32
    %c0_i32_0 = arith.constant 0 : i32
    %c0_i32_1 = arith.constant 0 : i32
    return %c0_i32, %c0_i32_0 : i32, i32
  }
  func.func @transform_3(%arg0: i32) -> (i32, i32) {
    %c0_i32 = arith.constant 0 : i32
    %c0_i32_0 = arith.constant 0 : i32
    return %arg0, %c0_i32 : i32, i32
  }
}

</mosaic_0001>

<bundles_post_ra>
// kernel: tpu_custom_call.1
= control target key start
LH: loop header
LB: loop body
LE: loop exit
PB: predicated region body
PF: predicated region fallthrough
CT: control target
= control target key end

     0   :  { %8 = vsyncpa [#allocation3], 0  ;;  %s686_s0 = inlined_call_operand.hbm [shape: f32[128,128], index: 0, kind: input, shape index: {}]   ;;  %s687_s1 = inlined_call_operand.hbm [shape: f32[128,128], index: 1, kind: input, shape index: {}]   ;;  %s688_s2 = inlined_call_operand.vmem [shape: f32[1,128], index: 2, kind: input, shape index: {}]   ;;  %s689_s3 = inlined_call_operand.hbm [shape: bf16[128,128], index: 3, kind: output, shape index: {}]  }
   0x1   :  { %9 = vsyncpa [#allocation6], 0 }
   0x2   :  { %10 = vsyncpa [#allocation4], 0  ;;  %s620_s12 = smov [#allocation2]   ;;  %s548_s16 = scalar_lea.hbm %s686_s0, 2048 }
   0x3   :  { %s16_s13 = sshll.u32 %s620_s12, 4  ;;  %p549_p0 = scmp.ne.s32.totalorder %s686_s0, %s548_s16  ;;  %s17_s13 = int_to_ptr.vmem [resolvable:$true] %s16_s13 }
   0x4   :  { %p552_p1 = scmp.lt.u32.totalorder %s548_s16, %s686_s0 }
   0x6   :  { %p554_p2 = pnand %p552_p1, %p549_p0 }
   0x8   :  { %557 = shalt.err (!%p554_p2)
}
   0x9   :  { %s558_s21 = scalar_lea.vmem %s17_s13, 2048  ;;  %p563_p4 = scmp.lt.s32.totalorder %s17_s13, %s17_s13 }
   0xa   :  { %p559_p3 = scmp.ne.s32.totalorder %s17_s13, %s558_s21  ;;  %p564_p5 = scmp.lt.s32.totalorder %s558_s21, %s558_s21 }
   0xc   :  { %p565_p6 = por %p564_p5, %p563_p4 }
   0xe   :  { %p566_p7 = pnand %p565_p6, %p559_p3 }
  0x10   :  { %569 = shalt.err (!%p566_p7)
}
  0x11   :  { %s621_s22 = smov 128   ;;  %s622_s23 = smov 8  }
  0x12   :  { %22 = dma.hbm_to_vmem [thread:$0]  %s686_s0, 2048, %s17_s13, [#allocation3], %s621_s22, %s621_s22, %s622_s23  }
  0x13   :  { %s623_s26 = smov [#allocation5]   ;;  %s570_s30 = scalar_lea.hbm %s687_s1, 2048 }
  0x14   :  { %s28_s27 = sshll.u32 %s623_s26, 4  ;;  %p571_p8 = scmp.ne.s32.totalorder %s687_s1, %s570_s30  ;;  %s29_s27 = int_to_ptr.vmem [resolvable:$true] %s28_s27 }
  0x15   :  { %p574_p9 = scmp.lt.u32.totalorder %s570_s30, %s687_s1 }
  0x17   :  { %p576_p10 = pnand %p574_p9, %p571_p8 }
  0x19   :  { %579 = shalt.err (!%p576_p10)
}
  0x1a   :  { %s580_s8 = scalar_lea.vmem %s29_s27, 2048  ;;  %p585_p12 = scmp.lt.s32.totalorder %s29_s27, %s29_s27 }
  0x1b   :  { %p581_p11 = scmp.ne.s32.totalorder %s29_s27, %s580_s8  ;;  %p586_p13 = scmp.lt.s32.totalorder %s580_s8, %s580_s8 }
  0x1d   :  { %p587_p0 = por %p586_p13, %p585_p12 }
  0x1f   :  { %p588_p1 = pnand %p587_p0, %p581_p11 }
  0x21   :  { %591 = shalt.err (!%p588_p1)
}
  0x22   :  { %34 = dma.hbm_to_vmem [thread:$0]  %s687_s1, 2048, %s29_s27, [#allocation6], %s621_s22, %s621_s22, %s622_s23  }
  0x23   :  { %614 = dma.done.wait [#allocation3], 2048  }
  0x24   :  { %615 = vsyncadd [#allocation3], 4294965248 }
  0x25   :  { %616 = dma.done.wait [#allocation6], 2048  }
  0x26   :  { %617 = vsyncadd [#allocation6], 4294965248  ;;  %v59_v0 = vld [vmem:[#allocation5] sm:$0xff]  ;;  %v60_v1 = vld [vmem:[#allocation5 + $0x8] sm:$0xff] }
  0x27   :  { %v61_v2 = vld [vmem:[#allocation5 + $0x10] sm:$0xff]  ;;  %v493_v3 = vpack.c.bf16 %v60_v1, %v59_v0  ;;  %v62_v4 = vld [vmem:[#allocation5 + $0x18] sm:$0xff]  ;;  %v63_v6 = vld [vmem:[#allocation5 + $0x20] sm:$0xff] }
  0x28   :  { %v497_v5 = vpack.c.bf16 %v62_v4, %v61_v2  ;;  %v64_v7 = vld [vmem:[#allocation5 + $0x28] sm:$0xff]  ;;  %v43_v9 = vld [vmem:[#allocation2] sm:$0xff]  ;;  %v65_v11 = vld [vmem:[#allocation5 + $0x30] sm:$0xff] }
  0x29   :  { %494 = vmatprep.subr.bf16.mxu0 %v493_v3  ;;  %525 = vmatprep.subr.bf16.mxu1 %v493_v3  ;;  %v501_v8 = vpack.c.bf16 %v64_v7, %v63_v6  ;;  %v51_v10 = vld [vmem:[#allocation2 + $0x40] sm:$0xff]  ;;  %v66_v12 = vld [vmem:[#allocation5 + $0x38] sm:$0xff]  ;;  %v68_v15 = vld [vmem:[#allocation5 + $0x48] sm:$0xff] }
  0x2a   :  { %496 = vmatpush3.bf16.msra.mxu0 %v493_v3  ;;  %533 = vmatpush3.bf16.msra.mxu1 %v493_v3  ;;  %v505_v13 = vpack.c.bf16 %v66_v12, %v65_v11  ;;  %v67_v14 = vld [vmem:[#allocation5 + $0x40] sm:$0xff]  ;;  %v69_v17 = vld [vmem:[#allocation5 + $0x50] sm:$0xff]  ;;  %v70_v18 = vld [vmem:[#allocation5 + $0x58] sm:$0xff] }
  0x2b   :  { %498 = vmatprep.subr.bf16.mxu0 %v497_v5  ;;  %526 = vmatprep.subr.bf16.mxu1 %v497_v5  ;;  %v509_v16 = vpack.c.bf16 %v68_v15, %v67_v14  ;;  %v513_v19 = vpack.c.bf16 %v70_v18, %v69_v17  ;;  %v71_v20 = vld [vmem:[#allocation5 + $0x60] sm:$0xff]  ;;  %v72_v21 = vld [vmem:[#allocation5 + $0x68] sm:$0xff]  ;;  %v73_v23 = vld [vmem:[#allocation5 + $0x70] sm:$0xff] }
  0x2c   :  { %469 = vmatprep.mubr.f32.mxu0 %v43_v9  ;;  %481 = vmatprep.mubr.f32.mxu1 %v51_v10  ;;  %v517_v22 = vpack.c.bf16 %v72_v21, %v71_v20  ;;  %v74_v24 = vld [vmem:[#allocation5 + $0x78] sm:$0xff]  ;;  %v44_v26 = vld [vmem:[#allocation2 + $0x8] sm:$0xff]  ;;  %v45_v28 = vld [vmem:[#allocation2 + $0x10] sm:$0xff] }
  0x2d   :  { %v521_v25 = vpack.c.bf16 %v74_v24, %v73_v23  ;;  %v52_v27 = vld [vmem:[#allocation2 + $0x48] sm:$0xff]  ;;  %v53_v29 = vld [vmem:[#allocation2 + $0x50] sm:$0xff]  ;;  %v46_v30 = vld [vmem:[#allocation2 + $0x18] sm:$0xff] }
  0x2e   :  { %500 = vmatpush3.bf16.msra.mxu0 %v497_v5  ;;  %534 = vmatpush3.bf16.msra.mxu1 %v497_v5  ;;  %v54_v31 = vld [vmem:[#allocation2 + $0x58] sm:$0xff]  ;;  %v47_v32 = vld [vmem:[#allocation2 + $0x20] sm:$0xff]  ;;  %v48_v34 = vld [vmem:[#allocation2 + $0x28] sm:$0xff] }
  0x2f   :  { %502 = vmatprep.subr.bf16.mxu0 %v501_v8  ;;  %527 = vmatprep.subr.bf16.mxu1 %v501_v8  ;;  %v55_v33 = vld [vmem:[#allocation2 + $0x60] sm:$0xff]  ;;  %v56_v35 = vld [vmem:[#allocation2 + $0x68] sm:$0xff]  ;;  %v49_v36 = vld [vmem:[#allocation2 + $0x30] sm:$0xff] }
  0x30   :  { %v57_v37 = vld [vmem:[#allocation2 + $0x70] sm:$0xff]  ;;  %v50_v38 = vld [vmem:[#allocation2 + $0x38] sm:$0xff]  ;;  %v325_v40 = vld [vmem:[%s688_s2] ss:$0 sm:$0xff]  ;;  %s624_s2 = smov [#allocation7]  }
  0x31   :  { %v58_v39 = vld [vmem:[#allocation2 + $0x78] sm:$0xff]  ;;  %s312_s11 = sshll.u32 %s624_s2, 4  ;;  %s313_s11 = int_to_ptr.vmem [resolvable:$true] %s312_s11 }
  0x32   :  { %504 = vmatpush3.bf16.msra.mxu0 %v501_v8  ;;  %535 = vmatpush3.bf16.msra.mxu1 %v501_v8  ;;  %s592_s12 = scalar_lea.vmem %s313_s11, 1024  ;;  %p597_p3 = scmp.lt.s32.totalorder %s313_s11, %s313_s11 }
  0x33   :  { %506 = vmatprep.subr.bf16.mxu0 %v505_v13  ;;  %528 = vmatprep.subr.bf16.mxu1 %v505_v13  ;;  %p593_p2 = scmp.ne.s32.totalorder %s313_s11, %s592_s12  ;;  %p598_p4 = scmp.lt.s32.totalorder %s592_s12, %s592_s12 }
  0x35   :  { %p599_p5 = por %p598_p4, %p597_p3 }
  0x36   :  { %508 = vmatpush3.bf16.msra.mxu0 %v505_v13  ;;  %536 = vmatpush3.bf16.msra.mxu1 %v505_v13 }
  0x37   :  { %510 = vmatprep.subr.bf16.mxu0 %v509_v16  ;;  %529 = vmatprep.subr.bf16.mxu1 %v509_v16  ;;  %p600_p6 = pnand %p599_p5, %p593_p2 }
  0x3a   :  { %512 = vmatpush3.bf16.msra.mxu0 %v509_v16  ;;  %537 = vmatpush3.bf16.msra.mxu1 %v509_v16 }
  0x3b   :  { %514 = vmatprep.subr.bf16.mxu0 %v513_v19  ;;  %530 = vmatprep.subr.bf16.mxu1 %v513_v19 }
  0x3e   :  { %516 = vmatpush3.bf16.msra.mxu0 %v513_v19  ;;  %538 = vmatpush3.bf16.msra.mxu1 %v513_v19 }
  0x3f   :  { %518 = vmatprep.subr.bf16.mxu0 %v517_v22  ;;  %531 = vmatprep.subr.bf16.mxu1 %v517_v22 }
  0x42   :  { %520 = vmatpush3.bf16.msra.mxu0 %v517_v22  ;;  %539 = vmatpush3.bf16.msra.mxu1 %v517_v22 }
  0x43   :  { %522 = vmatprep.subr.bf16.mxu0 %v521_v25  ;;  %532 = vmatprep.subr.bf16.mxu1 %v521_v25 }
  0x46   :  { %524 = vmatpush3.bf16.msra.mxu0 %v521_v25  ;;  %540 = vmatpush3.bf16.msra.mxu1 %v521_v25 }
  0x49   :  { %470 = vmatmul.mubr.f32.vlgmr.msra.gmra.mrb[0].mxu0 %v44_v26  ;;  %482 = vmatmul.mubr.f32.vlgmr.msra.gmra.mrb[0].mxu1 %v52_v27 }
  0x4a   :  { %472 = vmatprep.mubr.f32.mxu0 %v45_v28  ;;  %484 = vmatprep.mubr.f32.mxu1 %v53_v29 }
  0x4d   :  { %473 = vmatmul.mubr.f32.gmra.mrb[2].mxu0 %v46_v30  ;;  %485 = vmatmul.mubr.f32.gmra.mrb[2].mxu1 %v54_v31 }
  0x4e   :  { %475 = vmatprep.mubr.f32.mxu0 %v47_v32  ;;  %487 = vmatprep.mubr.f32.mxu1 %v55_v33 }
  0x51   :  { %476 = vmatmul.mubr.f32.gmra.mrb[4].mxu0 %v48_v34  ;;  %488 = vmatmul.mubr.f32.gmra.mrb[4].mxu1 %v56_v35 }
  0x52   :  { %478 = vmatprep.mubr.f32.mxu0 %v49_v36  ;;  %490 = vmatprep.mubr.f32.mxu1 %v57_v37 }
  0x55   :  { %479 = vmatmul.mubr.f32.gmra.mrb[6].mxu0 %v50_v38  ;;  %491 = vmatmul.mubr.f32.gmra.mrb[6].mxu1 %v58_v39 }
 0x11c   :  { %v471_v41 = vpop.f32.mrb[0].mxu0  ;;  %v483_v42 = vpop.f32.mrb[0].mxu1 }
 0x11d   :  { %v154_v43 = vadd.f32 %v471_v41, %v325_v40  ;;  %v194_v44 = vadd.f32 %v483_v42, %v325_v40  ;;  %v148_v45 = vpop.f32.mrb[1].mxu0  ;;  %v188_v46 = vpop.f32.mrb[1].mxu1 }
 0x11e   :  { %v149_v47 = vadd.f32 %v325_v40, %v148_v45  ;;  %v189_v48 = vadd.f32 %v325_v40, %v188_v46 }
 0x120   :  { %v361_v49 = vpack.c.bf16 %v154_v43, %v149_v47  ;;  %v381_v50 = vpack.c.bf16 %v194_v44, %v189_v48  ;;  %v474_v51 = vpop.f32.mrb[2].mxu0  ;;  %v486_v52 = vpop.f32.mrb[2].mxu1 }
 0x121   :  { %v164_v53 = vadd.f32 %v474_v51, %v325_v40  ;;  %v204_v54 = vadd.f32 %v486_v52, %v325_v40  ;;  %v158_v55 = vpop.f32.mrb[3].mxu0  ;;  %v198_v56 = vpop.f32.mrb[3].mxu1 }
 0x122   :  { %362 = vst [vmem:[#allocation7] sm:$0xff] %v361_v49   ;;  %401 = vst [vmem:[#allocation7 + $0x20] sm:$0xff] %v381_v50   ;;  %v159_v57 = vadd.f32 %v325_v40, %v158_v55  ;;  %v199_v58 = vadd.f32 %v325_v40, %v198_v56 }
 0x124   :  { %v366_v59 = vpack.c.bf16 %v164_v53, %v159_v57  ;;  %v386_v60 = vpack.c.bf16 %v204_v54, %v199_v58  ;;  %v477_v61 = vpop.f32.mrb[4].mxu0  ;;  %v489_v62 = vpop.f32.mrb[4].mxu1 }
 0x125   :  { %v174_v63 = vadd.f32 %v477_v61, %v325_v40  ;;  %v214_v0 = vadd.f32 %v489_v62, %v325_v40  ;;  %v168_v1 = vpop.f32.mrb[5].mxu0  ;;  %v208_v2 = vpop.f32.mrb[5].mxu1 }
 0x126   :  { %398 = vst [vmem:[#allocation7 + $0x8] sm:$0xff] %v366_v59   ;;  %402 = vst [vmem:[#allocation7 + $0x28] sm:$0xff] %v386_v60   ;;  %v169_v3 = vadd.f32 %v325_v40, %v168_v1  ;;  %v209_v4 = vadd.f32 %v325_v40, %v208_v2 }
 0x128   :  { %v371_v5 = vpack.c.bf16 %v174_v63, %v169_v3  ;;  %v391_v6 = vpack.c.bf16 %v214_v0, %v209_v4  ;;  %v480_v7 = vpop.f32.mrb[6].mxu0  ;;  %v492_v8 = vpop.f32.mrb[6].mxu1 }
 0x129   :  { %v184_v9 = vadd.f32 %v480_v7, %v325_v40  ;;  %v224_v10 = vadd.f32 %v492_v8, %v325_v40  ;;  %v178_v11 = vpop.f32.mrb[7].mxu0  ;;  %v218_v12 = vpop.f32.mrb[7].mxu1 }
 0x12a   :  { %399 = vst [vmem:[#allocation7 + $0x10] sm:$0xff] %v371_v5   ;;  %403 = vst [vmem:[#allocation7 + $0x30] sm:$0xff] %v391_v6   ;;  %v179_v13 = vadd.f32 %v325_v40, %v178_v11  ;;  %v219_v14 = vadd.f32 %v325_v40, %v218_v12 }
 0x12c   :  { %v376_v15 = vpack.c.bf16 %v184_v9, %v179_v13  ;;  %v396_v16 = vpack.c.bf16 %v224_v10, %v219_v14 }
 0x12e   :  { %400 = vst [vmem:[#allocation7 + $0x18] sm:$0xff] %v376_v15   ;;  %404 = vst [vmem:[#allocation7 + $0x38] sm:$0xff] %v396_v16  }
 0x12f   :  { %603 = shalt.err (!%p600_p6)
}
 0x130   :  { %s604_s15 = scalar_lea.hbm %s689_s3, 1024 }
 0x131   :  { %p605_p7 = scmp.ne.s32.totalorder %s689_s3, %s604_s15  ;;  %p608_p8 = scmp.lt.u32.totalorder %s604_s15, %s689_s3 }
 0x133   :  { %p610_p9 = pnand %p608_p8, %p605_p7 }
 0x135   :  { %613 = shalt.err (!%p610_p9)
}
 0x136   :  { %s625_s20 = smov 64   ;;  %s626_s21 = smov 4  }
 0x137   :  { %318 = dma.vmem_to_hbm [thread:$0]  %s313_s11, 1024, %s689_s3, [#allocation4], %s625_s20, %s625_s20, %s626_s21  }
 0x138   :  { %618 = dma.done.wait [#allocation4], 1024  }
 0x139   :  { %619 = vsyncadd [#allocation4], 4294966272 }
 0x13a   :  { %322 = vsyncpa [#allocation3], 1 }
 0x13b   :  { %323 = vsyncpa [#allocation6], 1 }
 0x13c   :  { %324 = vsyncpa [#allocation4], 1 }

</bundles_post_ra>
